<compile_context>
chip_gen: v7x
topology: tpu7x:2x2x1
jax: 0.10.0
libtpu: 0.0.40
codegen_flags: <defaults>
</compile_context>

<pallas_src>
import jax
import jax.numpy as jnp
from jax import lax
from jax.experimental import pallas as pl
from jax.experimental.pallas import tpu as pltpu

# ---- model hyper-parameters (synthetic, deterministic) ----------------------
CAT_COLS = ['floor_level', 'direction_simple', 'decoration', 'elevator', 'ownership']
EMBEDDING_SIZES = [6, 4, 5, 2, 3]          # len(encoders[col].classes_) stand-ins
EMB_DIM = 8
N_CONT = 6
HIDDEN = 64
D_IN = N_CONT + EMB_DIM * len(EMBEDDING_SIZES)   # 6 + 40 = 46

# static one-hot bookkeeping
_OFFSETS = []
_acc = 0
for _v in EMBEDDING_SIZES:
    _OFFSETS.append(_acc)
    _acc += _v
TOTAL_VOCAB = _acc                                           # 20
_OWNER = [g for g, v in enumerate(EMBEDDING_SIZES) for _ in range(v)]  # len 20
VOCAB_PAD = 32                                               # 20 -> 32 sublanes (int8 tile)
CONT_PAD = 8                                                 # 6  -> 8 sublanes


def _round_up(x, m):
    return ((x + m - 1) // m) * m


def _fused_kernel(ids_ref, cont_ref, weT_ref, wcT_ref, b1_ref, w2_ref, b2_ref,
                  out_ref):
    """One batch tile of the fused forward (batch on the lane axis).

    ids_ref : (VOCAB_PAD, TB) int8   adjusted ids repeated per vocab slot
                                     (pad rows/cols filled with -1)
    cont_ref: (CONT_PAD, TB)  f32    continuous features (pad rows zero)
    weT_ref : (64, VOCAB_PAD) f32    fused emb_g @ W1_rows, transposed, zero-padded
    wcT_ref : (64, CONT_PAD)  f32    W1 continuous rows, transposed, zero-padded
    b1_ref  : (64, 1)         f32
    w2_ref  : (64, 1)         f32
    b2_ref  : (1, 1)          f32    SMEM scalar
    out_ref : (1, TB)         f32    lane-dense output block
    """
    ids = ids_ref[...].astype(jnp.int32)                        # (VP, TB)
    vp, tb = ids.shape
    row = lax.broadcasted_iota(jnp.int32, (vp, tb), 0)           # sublane iota
    one_hot = (ids == row).astype(jnp.float32)                   # (VP, TB)

    # embedding lookup + concat + fc1 in one MXU push, plus continuous part
    h = jnp.dot(weT_ref[...], one_hot, preferred_element_type=jnp.float32)
    h = h + jnp.dot(wcT_ref[...], cont_ref[...],
                    preferred_element_type=jnp.float32)           # (64, TB)
    h = jnp.maximum(h + b1_ref[...], 0.0)                         # ReLU

    # (1,64) @ (64,TB) head done as VPU mul + XLU sublane reduce (MXU stays free)
    out_ref[...] = (jnp.sum(h * w2_ref[...], axis=0, keepdims=True)
                    + b2_ref[0, 0])


def _choose_tile_b(B, tile_b):
    # lane tile must be a multiple of 128
    tile_b = max(128, _round_up(tile_b, 128))
    # keep >= 2 grid steps when the batch allows it (v7x megacore sharding)
    half = _round_up(max(1, (B + 1) // 2), 128)
    return min(tile_b, half)


def embedding_house_forward(x_cont, x_cat, params, tile_b=2048):
    """Batch-gridded, pipelined fused forward (batch on the lane axis)."""
    B = x_cont.shape[0]
    n_emb = len(EMBEDDING_SIZES)

    # ---- host/XLA-side weight pre-fusion (constant under jit) ----------------
    w1 = params['w1'].astype(jnp.float32)                         # (46, 64)
    emb_rows = [params['emb'][g].astype(jnp.float32)
                @ w1[g * EMB_DIM:(g + 1) * EMB_DIM]
                for g in range(n_emb)]                            # (V_g, 64) each
    we = jnp.concatenate(emb_rows, axis=0)                        # (20, 64)
    we = jnp.pad(we, ((0, VOCAB_PAD - TOTAL_VOCAB), (0, 0)))      # (32, 64)
    weT = we.T                                                    # (64, 32)
    wc = jnp.pad(w1[EMB_DIM * n_emb:], ((0, CONT_PAD - N_CONT), (0, 0)))  # (8, 64)
    wcT = wc.T                                                    # (64, 8)
    b1 = params['b1'].reshape(HIDDEN, 1).astype(jnp.float32)      # (64, 1)
    w2 = params['w2'].reshape(HIDDEN, 1).astype(jnp.float32)      # (64, 1)
    b2 = params['b2'].reshape(1, 1).astype(jnp.float32)           # (1, 1) SMEM

    # ---- host/XLA-side input plumbing (pure layout work, outside the kernel) -
    adj = x_cat.astype(jnp.int32) + jnp.asarray(_OFFSETS, jnp.int32)[None, :]
    expanded = adj[:, jnp.asarray(_OWNER, jnp.int32)]             # (B, 20)
    ids_t = expanded.T                                            # (20, B)
    cont_t = x_cont.astype(jnp.float32).T                         # (6, B)

    # ---- batch tiling ---------------------------------------------------------
    tile_b = _choose_tile_b(B, tile_b)
    Bp = _round_up(B, tile_b)

    # pad sublanes + batch; id fill value -1 never matches the iota -> zero one-hot
    ids_t = jnp.pad(ids_t, ((0, VOCAB_PAD - TOTAL_VOCAB), (0, Bp - B)),
                    constant_values=-1).astype(jnp.int8)          # (32, Bp) int8
    cont_t = jnp.pad(cont_t, ((0, CONT_PAD - N_CONT), (0, Bp - B)))  # (8, Bp) f32

    out = pl.pallas_call(
        _fused_kernel,
        out_shape=jax.ShapeDtypeStruct((1, Bp), jnp.float32),
        grid=(Bp // tile_b,),
        in_specs=[
            pl.BlockSpec((VOCAB_PAD, tile_b), lambda i: (0, i)),   # ids, batch-tiled
            pl.BlockSpec((CONT_PAD, tile_b), lambda i: (0, i)),    # cont, batch-tiled
            pl.BlockSpec((HIDDEN, VOCAB_PAD), lambda i: (0, 0)),   # VMEM-resident
            pl.BlockSpec((HIDDEN, CONT_PAD), lambda i: (0, 0)),    # VMEM-resident
            pl.BlockSpec((HIDDEN, 1), lambda i: (0, 0)),           # b1
            pl.BlockSpec((HIDDEN, 1), lambda i: (0, 0)),           # w2
            pl.BlockSpec(memory_space=pltpu.MemorySpace.SMEM),     # (1,1) scalar b2
        ],
        out_specs=pl.BlockSpec((1, tile_b), lambda i: (0, i)),     # lane-dense
        compiler_params=pltpu.CompilerParams(
            dimension_semantics=("parallel",),     # megacore sharding on v7x
            vmem_limit_bytes=32 * 1024 * 1024,
        ),
    )(ids_t, cont_t, weT, wcT, b1, w2, b2)

    return out[0, :B].reshape(B, 1)


def init_params(key):
    ks = jax.random.split(key, 4 + len(EMBEDDING_SIZES))
    emb = tuple(
        jax.random.normal(ks[i], (v, EMB_DIM), jnp.float32) * 0.1
        for i, v in enumerate(EMBEDDING_SIZES)
    )
    o = len(EMBEDDING_SIZES)
    w1 = jax.random.normal(ks[o + 0], (D_IN, HIDDEN), jnp.float32) * 0.1
    b1 = jax.random.normal(ks[o + 1], (1, HIDDEN), jnp.float32) * 0.1
    w2 = jax.random.normal(ks[o + 2], (HIDDEN, 1), jnp.float32) * 0.1
    b2 = jax.random.normal(ks[o + 3], (1, 1), jnp.float32) * 0.1
    return {'emb': emb, 'w1': w1, 'b1': b1, 'w2': w2, 'b2': b2}


def reference_forward(x_cont, x_cat, params):
    """Pure-JAX replica of the PyTorch forward for correctness checking."""
    embs = [params['emb'][i][x_cat[:, i]] for i in range(len(EMBEDDING_SIZES))]
    x = jnp.concatenate(embs + [x_cont], axis=1)          # (B, D_IN)
    h = jnp.maximum(x @ params['w1'] + params['b1'], 0.0)
    return h @ params['w2'] + params['b2']


if __name__ == "__main__":
    key = jax.random.PRNGKey(0)
    k_p, k_cont, k_cat = jax.random.split(key, 3)

    B = 200                      # not a tile multiple -> exercises padding path
    params = init_params(k_p)
    x_cont = jax.random.normal(k_cont, (B, N_CONT), jnp.float32)
    cat_keys = jax.random.split(k_cat, len(EMBEDDING_SIZES))
    x_cat = jnp.stack(
        [jax.random.randint(cat_keys[i], (B,), 0, EMBEDDING_SIZES[i], jnp.int32)
         for i in range(len(EMBEDDING_SIZES))],
        axis=1,
    )  # (B, 5) int32

    out = embedding_house_forward(x_cont, x_cat, params)   # tile_b clamps -> grid=(2,)
    out = jax.block_until_ready(out)

    ref = reference_forward(x_cont, x_cat, params)
    assert out.shape == (B, 1)
    assert jnp.allclose(out, ref, atol=1e-4, rtol=1e-4), (out, ref)

    print("KERNEL_OK")
</pallas_src>

<mosaic_0001>
module attributes {stable_mosaic.version = 11 : i64} {
  func.func @_fused_kernel(%arg0: i32, %arg1: memref<32x128xi8, #tpu.memory_space<vmem>>, %arg2: memref<8x128xf32, #tpu.memory_space<vmem>>, %arg3: memref<64x32xf32, #tpu.memory_space<vmem>>, %arg4: memref<64x8xf32, #tpu.memory_space<vmem>>, %arg5: memref<64x1xf32, #tpu.memory_space<vmem>>, %arg6: memref<64x1xf32, #tpu.memory_space<vmem>>, %arg7: memref<1x1xf32, #tpu.memory_space<smem>>, %arg8: memref<1x128xf32, #tpu.memory_space<vmem>>) attributes {dimension_semantics = [#tpu.dimension_semantics<parallel>], iteration_bounds = array<i64: 2>, scalar_prefetch = 0 : i64, scratch_operands = 0 : i64, tpu.core_type = #tpu.core_type<tc>, window_params = [{transform_indices = @transform_0, window_bounds = array<i64: 32, 128>}, {transform_indices = @transform_1, window_bounds = array<i64: 8, 128>}, {pipeline_mode = #tpu.pipeline_mode<synchronous>, transform_indices = @transform_2, window_bounds = array<i64: 64, 32>}, {pipeline_mode = #tpu.pipeline_mode<synchronous>, transform_indices = @transform_3, window_bounds = array<i64: 64, 8>}, {pipeline_mode = #tpu.pipeline_mode<synchronous>, transform_indices = @transform_4, window_bounds = array<i64: 64, 1>}, {pipeline_mode = #tpu.pipeline_mode<synchronous>, transform_indices = @transform_5, window_bounds = array<i64: 64, 1>}, {transform_indices = @transform_6, window_bounds = array<i64: 1, 1>}, {transform_indices = @transform_7, window_bounds = array<i64: 1, 128>}]} {
    %c0 = arith.constant 0 : index
    %c0_0 = arith.constant 0 : index
    %0 = vector.load %arg1[%c0, %c0_0] : memref<32x128xi8, #tpu.memory_space<vmem>>, vector<32x128xi8>
    %1 = arith.extsi %0 : vector<32x128xi8> to vector<32x128xi32>
    %2 = tpu.iota {dimensions = array<i32: 0>} : vector<32x128xi32>
    %3 = arith.cmpi eq, %1, %2 : vector<32x128xi32>
    %4 = arith.extui %3 : vector<32x128xi1> to vector<32x128xi32>
    %5 = arith.sitofp %4 : vector<32x128xi32> to vector<32x128xf32>
    %c0_1 = arith.constant 0 : index
    %c0_2 = arith.constant 0 : index
    %6 = vector.load %arg3[%c0_1, %c0_2] : memref<64x32xf32, #tpu.memory_space<vmem>>, vector<64x32xf32>
    %cst = arith.constant dense<0.000000e+00> : vector<64x128xf32>
    %7 = tpu.matmul %6, %5, %cst {dimension_numbers = #tpu.dot_dimension_numbers<[1], [0], [0], [1], [0, 0, 1, 1], [], []>} : vector<64x32xf32>, vector<32x128xf32>, vector<64x128xf32> -> vector<64x128xf32>
    %c0_3 = arith.constant 0 : index
    %c0_4 = arith.constant 0 : index
    %8 = vector.load %arg4[%c0_3, %c0_4] : memref<64x8xf32, #tpu.memory_space<vmem>>, vector<64x8xf32>
    %c0_5 = arith.constant 0 : index
    %c0_6 = arith.constant 0 : index
    %9 = vector.load %arg2[%c0_5, %c0_6] : memref<8x128xf32, #tpu.memory_space<vmem>>, vector<8x128xf32>
    %cst_7 = arith.constant dense<0.000000e+00> : vector<64x128xf32>
    %10 = tpu.matmul %8, %9, %cst_7 {dimension_numbers = #tpu.dot_dimension_numbers<[1], [0], [0], [1], [0, 0, 1, 1], [], []>} : vector<64x8xf32>, vector<8x128xf32>, vector<64x128xf32> -> vector<64x128xf32>
    %11 = arith.addf %7, %10 : vector<64x128xf32>
    %c0_8 = arith.constant 0 : index
    %c0_9 = arith.constant 0 : index
    %12 = vector.load %arg5[%c0_8, %c0_9] : memref<64x1xf32, #tpu.memory_space<vmem>>, vector<64x1xf32>
    %13 = vector.broadcast %12 : vector<64x1xf32> to vector<64x128xf32>
    %14 = arith.addf %11, %13 : vector<64x128xf32>
    %cst_10 = arith.constant 0.000000e+00 : f32
    %15 = vector.broadcast %cst_10 : f32 to vector<64x128xf32>
    %16 = arith.maximumf %14, %15 : vector<64x128xf32>
    %c0_11 = arith.constant 0 : index
    %c0_12 = arith.constant 0 : index
    %17 = vector.load %arg6[%c0_11, %c0_12] : memref<64x1xf32, #tpu.memory_space<vmem>>, vector<64x1xf32>
    %18 = vector.broadcast %17 : vector<64x1xf32> to vector<64x128xf32>
    %19 = arith.mulf %16, %18 : vector<64x128xf32>
    %cst_13 = arith.constant dense<0.000000e+00> : vector<128xf32>
    %20 = vector.multi_reduction <add>, %19, %cst_13 [0] : vector<64x128xf32> to vector<128xf32>
    %21 = vector.shape_cast %20 : vector<128xf32> to vector<1x128xf32>
    %c0_14 = arith.constant 0 : index
    %c0_15 = arith.constant 0 : index
    %22 = memref.load %arg7[%c0_14, %c0_15] : memref<1x1xf32, #tpu.memory_space<smem>>
    %23 = vector.broadcast %22 : f32 to vector<1x128xf32>
    %24 = arith.addf %21, %23 : vector<1x128xf32>
    %c0_16 = arith.constant 0 : index
    %c0_17 = arith.constant 0 : index
    %25 = vector.load %arg8[%c0_16, %c0_17] : memref<1x128xf32, #tpu.memory_space<vmem>>, vector<1x128xf32>
    tpu.vector_store %arg8[%c0_16, %c0_17], %24 {strides = array<i32>} : memref<1x128xf32, #tpu.memory_space<vmem>>, vector<1x128xf32>,
    return
  }
  func.func @transform_0(%arg0: i32) -> (i32, i32) {
    %c0_i32 = arith.constant 0 : i32
    %c0_i32_0 = arith.constant 0 : i32
    return %c0_i32, %arg0 : i32, i32
  }
  func.func @transform_1(%arg0: i32) -> (i32, i32) {
    %c0_i32 = arith.constant 0 : i32
    %c0_i32_0 = arith.constant 0 : i32
    return %c0_i32, %arg0 : i32, i32
  }
  func.func @transform_2(%arg0: i32) -> (i32, i32) {
    %c0_i32 = arith.constant 0 : i32
    %c0_i32_0 = arith.constant 0 : i32
    %c0_i32_1 = arith.constant 0 : i32
    return %c0_i32, %c0_i32_0 : i32, i32
  }
  func.func @transform_3(%arg0: i32) -> (i32, i32) {
    %c0_i32 = arith.constant 0 : i32
    %c0_i32_0 = arith.constant 0 : i32
    %c0_i32_1 = arith.constant 0 : i32
    return %c0_i32, %c0_i32_0 : i32, i32
  }
  func.func @transform_4(%arg0: i32) -> (i32, i32) {
    %c0_i32 = arith.constant 0 : i32
    %c0_i32_0 = arith.constant 0 : i32
    %c0_i32_1 = arith.constant 0 : i32
    return %c0_i32, %c0_i32_0 : i32, i32
  }
  func.func @transform_5(%arg0: i32) -> (i32, i32) {
    %c0_i32 = arith.constant 0 : i32
    %c0_i32_0 = arith.constant 0 : i32
    %c0_i32_1 = arith.constant 0 : i32
    return %c0_i32, %c0_i32_0 : i32, i32
  }
  func.func @transform_6(%arg0: i32) -> (i32, i32) {
    %c0_i32 = arith.constant 0 : i32
    %c0_i32_0 = arith.constant 0 : i32
    %c0_i32_1 = arith.constant 0 : i32
    return %c0_i32, %c0_i32_0 : i32, i32
  }
  func.func @transform_7(%arg0: i32) -> (i32, i32) {
    %c0_i32 = arith.constant 0 : i32
    %c0_i32_0 = arith.constant 0 : i32
    return %c0_i32, %arg0 : i32, i32
  }
}

</mosaic_0001>

<bundles_post_ra>
// kernel: tpu_custom_call.1
= control target key start
LH: loop header
LB: loop body
LE: loop exit
PB: predicated region body
PF: predicated region fallthrough
CT: control target
= control target key end

     0   :  { %s1295_s0 = inlined_call_operand.vmem [shape: s8[32,256], index: 0, kind: input, shape index: {}]   ;;  %s1296_s1 = inlined_call_operand.vmem [shape: f32[8,256], index: 1, kind: input, shape index: {}]   ;;  %s1297_s2 = inlined_call_operand.vmem [shape: f32[64,32], index: 2, kind: input, shape index: {}]   ;;  %s1298_s3 = inlined_call_operand.vmem [shape: f32[64,8], index: 3, kind: input, shape index: {}]   ;;  %s1299_s4 = inlined_call_operand.vmem [shape: f32[64,1], index: 4, kind: input, shape index: {}]   ;;  %s1300_s5 = inlined_call_operand.vmem [shape: f32[64,1], index: 5, kind: input, shape index: {}]   ;;  %s1301_s6 = inlined_call_operand.<no memory space> [shape: f32[1,1], index: 6, kind: input, shape index: {}]   ;;  %s1302_s7 = inlined_call_operand.hbm [shape: f32[1,256], index: 7, kind: output, shape index: {}]  }
   0x1   :  { %12 = sst [smem:[#allocation2]] %s1301_s6 }
   0x2   :  { %13 = vsyncpa [#allocation4], 0 }
   0x3   :  { %15 = vsyncpa [#allocation4 + $0x1], 0  ;;  %s1068_s26 = smov 0   ;;  %s1070_s27 = smov 0  }
   0x4   :  { %s1072_s28 = smov 0   ;;  %s1074_s29 = smov 0  }
   0x5 LB: > { %s1089_s6 = sadd.s32 4294967295, %s1020_s29   ;;  %s807_s30 = sadd.s32 4294967294, %s1020_s29   ;;  %s1020_s29 = sphi %s1074_s29, %s1310_s29   ;;  %s1016_s28 = sphi %s1072_s28, %s1309_s28   ;;  %s1012_s27 = sphi %s1070_s27, %s1308_s27   ;;  %s1008_s26 = sphi %s1068_s26, %s1307_s26  }
   0x6   : > { %s1093_s8 = sadd.s32 1, %s1020_s29   ;;  %s185_s9 = sadd.s32 1, %s1016_s28 }
   0x7   : > { %s182_s10 = ssub.s32 %s1020_s29, %s1093_s8  ;;  %p195_p0 = scmp.ne.s32.totalorder %s1016_s28, %s1012_s27 }
   0x8   : > { %p183_p1 = scmp.eq.s32.totalorder %s182_s10, 0  ;;  %p196_p2 = scmp.eq.s32.totalorder %s1089_s6, 1 }
   0x9   : > { %p201_p3 = scmp.ne.s32.totalorder %s1012_s27, %s1008_s26  ;;  %p202_p4 = scmp.eq.s32.totalorder %s807_s30, 1 }
   0xa   : > { %s1104_s11 = scalar_select %p183_p1, %s1016_s28, %s185_s9  }
   0xb   : > { %p1106_p5 = por %p196_p2, %p195_p0  ;;  %p1110_p6 = por %p202_p4, %p201_p3 }
   0xc   : > { %p810_p7 = scmp.ge.s32.totalorder %s1020_s29, 1  ;;  %p249_p8 = scmp.lt.s32.totalorder %s1020_s29, 3 }
   0xe   : > { %p250_p9 = pnand %p810_p7, %p249_p8 }
   0xf   : > { %p283_p10 = scmp.lt.s32.totalorder (!%p250_p9), %s1089_s6, 1  ;;  %v321_v0 = vld [vmem:[%s1298_s3] sm:$0xff] (!%p250_p9)  ;;  %vm330_vm0 = vcmask (!%p250_p9), 64512   ;;  %v296_v1 = vlaneseq (!%p250_p9)  ;;  %vm460_vm1 = vcmask (!%p250_p9), 261120   ;;  %v315_v3 = vld [vmem:[%s1297_s2 + $0x10] sm:$0xff] (!%p250_p9)  ;;  %v1022_v4 = vmov (!%p250_p9), 0  }
  0x10   : > { %253 = sbr.rel (%p250_p9) target bundleno = 308 (0x134), region = 48  ;;  %863 = vmatprep.mubr.msk.f32.mxu0 (!%p250_p9), %vm330_vm0, %v321_v0  ;;  %956 = vset.pattern.permute.xlu0 (!%p250_p9), %v1022_v4  ;;  %v322_v5 = vld [vmem:[%s1298_s3 + $0x8] sm:$0xff] (!%p250_p9)  ;;  %v590_v11 = vld [vmem:[%s1299_s4] sm:$0xff] (!%p250_p9)  ;;  %v323_v14 = vld [vmem:[%s1298_s3 + $0x10] sm:$0xff] (!%p250_p9)  ;;  %v1023_v19 = vmov (!%p250_p9), 1.0|1.0  }
  0x11   : > { %v297_v2 = vshrl.u32 (!%p250_p9), %v296_v1, 7  ;;  %957 = vset.pattern.permute.xlu1 (!%p250_p9), %v1022_v4  ;;  %886 = vmatprep.mubr.msk.f32.mxu1 (!%p250_p9), %vm460_vm1, %v315_v3  ;;  %v592_v17 = vld [vmem:[%s1299_s4 + $0x10] sm:$0xff] (!%p250_p9)  ;;  %v324_v18 = vld [vmem:[%s1298_s3 + $0x18] sm:$0xff] (!%p250_p9)  ;;  %v325_v21 = vld [vmem:[%s1298_s3 + $0x20] sm:$0xff] (!%p250_p9)  ;;  %s723_s30 = sld [smem:[#allocation2]] (!%p250_p9)  ;;  %s281_s9 = sand.u32 (!%p250_p9), 1, %s1012_s27  }
  0x12   : > { %600 = vperm.xlu0 (!%p250_p9), %956, %v590_v11   ;;  %610 = vperm.xlu1 (!%p250_p9), %957, %v592_v17   ;;  %v591_v22 = vld [vmem:[%s1299_s4 + $0x8] sm:$0xff] (!%p250_p9)  ;;  %v593_v23 = vld [vmem:[%s1299_s4 + $0x18] sm:$0xff] (!%p250_p9)  ;;  %v327_v25 = vld [vmem:[%s1298_s3 + $0x30] sm:$0xff] (!%p250_p9)  ;;  %s837_s10 = sshll.u32 (!%p250_p9), %s1089_s6, 4  ;;  %s282_s14 = scalar_lea.vmem (!%p250_p9), [#allocation3], %s281_s9 }
  0x13   : > { %v298_v6 = vadd.s32 (!%p250_p9), 8, %v297_v2  ;;  %v299_v7 = vadd.s32 (!%p250_p9), 16, %v297_v2  ;;  %v300_v8 = vadd.s32 (!%p250_p9), 24, %v297_v2  ;;  %v326_v24 = vld [vmem:[%s1298_s3 + $0x28] sm:$0xff] (!%p250_p9)  ;;  %v316_v26 = vld [vmem:[%s1297_s2 + $0x18] sm:$0xff] (!%p250_p9)  ;;  %v654_v27 = vld [vmem:[%s1300_s5] sm:$0xff] (!%p250_p9)  ;;  %s1253_s18 = scalar_lea.hbm (!%p250_p9), %s1302_s7, %s837_s10 }
  0x14   : > { %v317_v28 = vld [vmem:[%s1297_s2 + $0x20] sm:$0xff] (!%p250_p9)  ;;  %v655_v29 = vld [vmem:[%s1300_s5 + $0x8] sm:$0xff] (!%p250_p9)  ;;  %v328_v30 = vld [vmem:[%s1298_s3 + $0x38] sm:$0xff] (!%p250_p9)  ;;  %s740_s15 = sshll.u32 (!%p250_p9), %s282_s14, 4  ;;  %s1255_s15 = int_to_ptr.vmem [resolvable:$true] %s740_s15 }
  0x15   : > { %v313_v31 = vld [vmem:[%s1297_s2] sm:$0xff] (!%p250_p9)  ;;  %v318_v32 = vld [vmem:[%s1297_s2 + $0x28] sm:$0xff] (!%p250_p9)  ;;  %v319_v34 = vld [vmem:[%s1297_s2 + $0x30] sm:$0xff] (!%p250_p9)  ;;  %s958_s20 = scalar_lea.vmem (!%p250_p9), %s1255_s15, 16 }
  0x16   : > { %605 = vperm.xlu0 (!%p250_p9), %956, %v591_v22   ;;  %615 = vperm.xlu1 (!%p250_p9), %957, %v593_v23   ;;  %v594_v33 = vld [vmem:[%s1299_s4 + $0x20] sm:$0xff] (!%p250_p9)  ;;  %v656_v35 = vld [vmem:[%s1300_s5 + $0x10] sm:$0xff] (!%p250_p9)  ;;  %v314_v36 = vld [vmem:[%s1297_s2 + $0x8] sm:$0xff] (!%p250_p9)  ;;  %p959_p11 = scmp.ne.s32.totalorder (!%p250_p9), %s1255_s15, %s958_s20 }
  0x17   : > { %s284_s16 = scalar_select %p283_p10, %s1089_s6, 1  ;;  %v320_v37 = vld [vmem:[%s1297_s2 + $0x38] sm:$0xff]  ;;  %v595_v38 = vld [vmem:[%s1299_s4 + $0x28] sm:$0xff]  ;;  %v596_v40 = vld [vmem:[%s1299_s4 + $0x30] sm:$0xff] }
  0x18   : > { %v657_v39 = vld [vmem:[%s1300_s5 + $0x18] sm:$0xff]  ;;  %v658_v41 = vld [vmem:[%s1300_s5 + $0x20] sm:$0xff]  ;;  %v659_v43 = vld [vmem:[%s1300_s5 + $0x28] sm:$0xff]  ;;  %p960_p12 = pnand %p959_p11, %p1106_p5  ;;  %s1024_s6 = smov [#allocation3]  }
  0x19   : > { %s811_s19 = sshll.u32 %s284_s16, 3  ;;  %v597_v42 = vld [vmem:[%s1299_s4 + $0x38] sm:$0xff]  ;;  %v660_v44 = vld [vmem:[%s1300_s5 + $0x30] sm:$0xff]  ;;  %s962_s21 = sshll.u32 %s1024_s6, 4  ;;  %s963_s21 = int_to_ptr.vmem [resolvable:$false] %s962_s21 }
  0x1a   : > { %s286_s22 = scalar_lea.vmem %s1295_s0, %s811_s19  ;;  %s290_s25 = scalar_lea.vmem %s1296_s1, %s811_s19  ;;  %664 = vperm.xlu0 %956, %v654_v27   ;;  %669 = vperm.xlu1 %957, %v655_v29   ;;  %v661_v45 = vld [vmem:[%s1300_s5 + $0x38] sm:$0xff] }
  0x1b   : > { %v291_v9 = vld [vmem:[%s286_s22] sm:$0xff]  ;;  %s728_s19 = scalar_lea.sflag [#allocation4], %s281_s9  ;;  %p961_p13 = pneg %p960_p12 }
  0x1c   : > { %v329_v10 = vld [vmem:[%s290_s25] sm:$0xff]  ;;  %v292_v12 = vunpack.c.0.s8 %v291_v9  ;;  %v293_v13 = vunpack.c.1.s8 %v291_v9  ;;  %v294_v15 = vunpack.c.2.s8 %v291_v9  ;;  %v295_v16 = vunpack.c.3.s8 %v291_v9  ;;  %s964_s22 = scalar_lea.vmem %s963_s21, 32  ;;  %p965_p0 = scmp.lt.s32.totalorder %s1255_s15, %s963_s21 }
  0x1d   : > { %861 = vmatprep.subr.mxu0 %v329_v10  ;;  %p966_p1 = scmp.lt.s32.totalorder %s964_s22, %s958_s20 }
  0x1e   : > { %862 = vmatpush3.msra.mxu0 %v329_v10  ;;  %vm301_vm2 = vcmp.eq.s32.totalorder %v292_v12, %v297_v2  ;;  %vm302_vm3 = vcmp.eq.s32.totalorder %v293_v13, %v298_v6  ;;  %vm303_vm4 = vcmp.eq.s32.totalorder %v294_v15, %v299_v7  ;;  %vm304_vm5 = vcmp.eq.s32.totalorder %v295_v16, %v300_v8 }
  0x1f   : > { %864 = vmatmul.mubr.msk.f32.vlgmr.msra.gmra.mrb[0].mxu0 %vm330_vm0, %v322_v5  ;;  %vm895_vm6 = vmpackc.low %vm302_vm3, %vm301_vm2  ;;  %620 = vperm.xlu0 %956, %v594_v33   ;;  %p967_p2 = por %p966_p1, %p965_p0 }
  0x20   : > { %866 = vmatprep.mubr.msk.f32.mxu0 %vm330_vm0, %v323_v14  ;;  %896 = vmatprep.subr.msk.bf16.mxu0 %vm895_vm6, %v1023_v19  ;;  %vm1149_vm7 = vmpackc.low %vm304_vm5, %vm303_vm4 }
  0x21   : > { %903 = vmatprep.subr.msk.bf16.mxu1 %vm895_vm6, %v1023_v19  ;;  %898 = vmatpush3.bf16.msk.msra.mxu0 %vm895_vm6, %v1023_v19  ;;  %p968_p3 = pnand %p967_p2, %p961_p13 }
  0x22   : > { %905 = vmatpush3.bf16.msk.msra.mxu1 %vm895_vm6, %v1023_v19  ;;  %900 = vmatprep.subr.msk.bf16.mxu0 %vm1149_vm7, %v1023_v19 }
  0x23   : > { %867 = vmatmul.mubr.msk.f32.gmra.mrb[2].mxu0 %vm330_vm0, %v324_v18  ;;  %904 = vmatprep.subr.msk.bf16.mxu1 %vm1149_vm7, %v1023_v19 }
  0x24   : > { %869 = vmatprep.mubr.msk.f32.mxu0 %vm330_vm0, %v325_v21  ;;  %674 = vperm.xlu1 %957, %v656_v35  }
  0x25   : > { %902 = vmatpush3.bf16.msk.msra.mxu0 %vm1149_vm7, %v1023_v19  ;;  %625 = vperm.xlu0 %956, %v595_v38  }
  0x26   : > { %906 = vmatpush3.bf16.msk.msra.mxu1 %vm1149_vm7, %v1023_v19 }
  0x27   : > { %870 = vmatmul.mubr.msk.f32.gmra.mrb[4].mxu0 %vm330_vm0, %v326_v24 }
  0x28   : > { %872 = vmatprep.mubr.msk.f32.mxu0 %vm330_vm0, %v327_v25  ;;  %679 = vperm.xlu1 %957, %v657_v39  }
  0x29   : > { %887 = vmatmul.mubr.msk.f32.vlgmr.msra.gmra.mrb[0].mxu1 %vm460_vm1, %v316_v26  ;;  %630 = vperm.xlu0 %956, %v596_v40  }
  0x2a   : > { %889 = vmatprep.mubr.msk.f32.mxu1 %vm460_vm1, %v317_v28 }
  0x2b   : > { %873 = vmatmul.mubr.msk.f32.gmra.mrb[6].mxu0 %vm330_vm0, %v328_v30 }
  0x2c   : > { %883 = vmatprep.mubr.msk.f32.mxu0 %vm460_vm1, %v313_v31  ;;  %684 = vperm.xlu1 %957, %v658_v41  }
  0x2d   : > { %890 = vmatmul.mubr.msk.f32.gmra.mrb[2].mxu1 %vm460_vm1, %v318_v32  ;;  %635 = vperm.xlu0 %956, %v597_v42  }
  0x2e   : > { %892 = vmatprep.mubr.msk.f32.mxu1 %vm460_vm1, %v319_v34 }
  0x2f   : > { %884 = vmatmul.mubr.msk.f32.vlgmr.msra.gmra.mrb[0].mxu0 %vm460_vm1, %v314_v36 }
  0x30   : > { %689 = vperm.xlu1 %957, %v659_v43  }
  0x31   : > { %893 = vmatmul.mubr.msk.f32.gmra.mrb[4].mxu1 %vm460_vm1, %v320_v37  ;;  %694 = vperm.xlu0 %956, %v660_v44  }
  0x34   : > { %699 = vperm.xlu1 %957, %v661_v45  }
  0x91   : > { %v601_v46 = vpop.permute.xlu0 %600  ;;  %v611_v47 = vpop.permute.xlu1 %610 }
  0x95   : > { %v606_v48 = vpop.permute.xlu0 %605  ;;  %v616_v49 = vpop.permute.xlu1 %615 }
  0x99   : > { %v665_v50 = vpop.permute.xlu0 %664  ;;  %v670_v51 = vpop.permute.xlu1 %669 }
  0x9e   : > { %v621_v54 = vpop.permute.xlu0 %620 }
  0xa3   : > { %v675_v56 = vpop.permute.xlu1 %674 }
  0xa4   : > { %v626_v63 = vpop.permute.xlu0 %625 }
  0xa7   : > { %v680_v2 = vpop.permute.xlu1 %679 }
  0xa8   : > { %v631_v13 = vpop.permute.xlu0 %630 }
  0xab   : > { %v685_v21 = vpop.permute.xlu1 %684 }
  0xac   : > { %v636_v30 = vpop.permute.xlu0 %635 }
  0xaf   : > { %v690_v35 = vpop.permute.xlu1 %689 }
  0xb0   : > { %v695_v42 = vpop.permute.xlu0 %694 }
  0xb3   : > { %v700_v45 = vpop.permute.xlu1 %699 }
  0xf6   : > { %v868_v52 = vpop.f32.mrb[2].mxu0 }
  0xf7   : > { %v431_v53 = vpop.f32.mrb[3].mxu0 }
  0xfa   : > { %v871_v55 = vpop.f32.mrb[4].mxu0 }
  0xfb   : > { %v441_v57 = vpop.f32.mrb[5].mxu0 }
  0xfc   : > { %v888_v58 = vpop.f32.mrb[0].mxu1 }
  0xfd   : > { %v567_v59 = vadd.f32 %v888_v58, %v868_v52  ;;  %v561_v60 = vpop.f32.mrb[1].mxu1 }
  0xfe   : > { %v562_v61 = vadd.f32 %v561_v60, %v431_v53  ;;  %v874_v62 = vpop.f32.mrb[6].mxu0 }
  0xff   : > { %v451_v0 = vpop.f32.mrb[7].mxu0  ;;  %v641_v10 = vadd.f32 %v616_v49, %v567_v59 }
 0x100   : > { %v891_v1 = vpop.f32.mrb[2].mxu1  ;;  %v640_v5 = vadd.f32 %v611_v47, %v562_v61 }
 0x101   : > { %v577_v3 = vadd.f32 %v891_v1, %v871_v55  ;;  %v571_v4 = vpop.f32.mrb[3].mxu1  ;;  %v649_v23 = vmax.f32 %v641_v10, 0.0 }
 0x102   : > { %v572_v6 = vadd.f32 %v571_v4, %v441_v57  ;;  %v885_v7 = vpop.f32.mrb[0].mxu0  ;;  %v648_v17 = vmax.f32 %v640_v5, 0.0 }
 0x103   : > { %v639_v8 = vadd.f32 %v885_v7, %v606_v48  ;;  %v551_v9 = vpop.f32.mrb[1].mxu0  ;;  %v643_v24 = vadd.f32 %v626_v63, %v577_v3  ;;  %v705_v31 = vmul.f32 %v680_v2, %v649_v23 }
 0x104   : > { %v638_v11 = vadd.f32 %v601_v46, %v551_v9  ;;  %v894_v12 = vpop.f32.mrb[4].mxu1  ;;  %v642_v18 = vadd.f32 %v621_v54, %v572_v6  ;;  %v704_v26 = vmul.f32 %v675_v56, %v648_v17  ;;  %v724_v54 = vstv %s723_s30 }
 0x105   : > { %v647_v14 = vmax.f32 %v639_v8, 0.0  ;;  %v587_v15 = vadd.f32 %v894_v12, %v874_v62  ;;  %v581_v16 = vpop.f32.mrb[5].mxu1  ;;  %v651_v32 = vmax.f32 %v643_v24, 0.0 }
 0x106   : > { %v646_v19 = vmax.f32 %v638_v11, 0.0  ;;  %v582_v20 = vadd.f32 %v581_v16, %v451_v0  ;;  %v650_v27 = vmax.f32 %v642_v18, 0.0 }
 0x107   : > { %v703_v22 = vmul.f32 %v670_v51, %v647_v14  ;;  %v645_v34 = vadd.f32 %v636_v30, %v587_v15  ;;  %v707_v39 = vmul.f32 %v690_v35, %v651_v32 }
 0x108   : > { %v702_v25 = vmul.f32 %v665_v50, %v646_v19  ;;  %v644_v29 = vadd.f32 %v631_v13, %v582_v20  ;;  %v706_v36 = vmul.f32 %v685_v21, %v650_v27 }
 0x109   : > { %v653_v40 = vmax.f32 %v645_v34, 0.0 }
 0x10a   : > { %v710_v28 = vadd.f32 %v703_v22, %v702_v25  ;;  %v652_v38 = vmax.f32 %v644_v29, 0.0 }
 0x10b   : > { %v709_v46 = vmul.f32 %v700_v45, %v653_v40 }
 0x10c   : > { %v711_v33 = vadd.f32 %v710_v28, %v704_v26  ;;  %v708_v43 = vmul.f32 %v695_v42, %v652_v38 }
 0x10e   : > { %v712_v37 = vadd.f32 %v711_v33, %v705_v31 }
 0x110   : > { %v713_v41 = vadd.f32 %v712_v37, %v706_v36 }
 0x112   : > { %v714_v44 = vadd.f32 %v713_v41, %v707_v39 }
 0x114   : > { %v715_v47 = vadd.f32 %v714_v44, %v708_v43 }
 0x116   : > { %v716_v48 = vadd.f32 %v715_v47, %v709_v46 }
 0x118   : > { %v717_v49 = vrot.slane %v716_v48, 4 }
 0x11a   : > { %v718_v50 = vadd.f32 %v717_v49, %v716_v48 }
 0x11c   : > { %v719_v51 = vrot.slane %v718_v50, 2 }
 0x11e   : > { %v720_v52 = vadd.f32 %v719_v51, %v718_v50 }
 0x120   : > { %v721_v53 = vrot.slane %v720_v52, 1 }
 0x122   : > { %v722_v55 = vadd.f32 %v721_v53, %v720_v52 }
 0x124   : > { %v725_v56 = vadd.f32 %v724_v54, %v722_v55 }
 0x126   : > { %726 = vst [vmem:[%s282_s14] sm:$0x1] %v725_v56 }
 0x127   : > { %971 = shalt.err (!%p968_p3)
}
 0x128   : > { %s972_s23 = scalar_lea.hbm %s1253_s18, 16  ;;  %s976_s30 = scalar_lea.hbm %s1302_s7, 32 }
 0x129   : > { %p973_p4 = scmp.ne.s32.totalorder %s1253_s18, %s972_s23  ;;  %p977_p9 = scmp.lt.u32.totalorder %s1253_s18, %s1302_s7 }
 0x12a   : > { %p978_p10 = scmp.lt.u32.totalorder %s976_s30, %s972_s23  ;;  %p980_p12 = scmp.lt.u32.totalorder %s972_s23, %s1253_s18 }
 0x12b   : > { %p974_p7 = pnand %p973_p4, %p1106_p5 }
 0x12c   : > { %p979_p11 = por %p978_p10, %p977_p9 }
 0x12d   : > { %p975_p8 = pneg %p974_p7 }
 0x12e   : > { %p981_p13 = por %p980_p12, %p979_p11 }
 0x130   : > { %p982_p0 = pnand %p981_p13, %p975_p8 }
 0x132   : > { %985 = shalt.err (!%p982_p0)
}
 0x133   : > { %915 = dma.vmem_to_hbm [thread:$0]  (%p1106_p5), %s1255_s15, 16, %s1253_s18, %s728_s19  }
 0x134 PF: > { %p921_p1 = scmp.ge.s32.totalorder %s1020_s29, 2  ;;  %s752_s14 = sand.u32 1, %s1008_s26  }
 0x135   : > { %s753_s16 = scalar_lea.sflag [#allocation4], %s752_s14 }
 0x136   : > { %p918_p2 = pnand %p921_p1, %p1110_p6 }
 0x138   : > { %1003 = dma.done.wait (!%p918_p2), %s753_s16, 16  }
 0x139   : > { %1005 = vsyncadd (!%p918_p2), %s753_s16, 4294967280  ;;  %p18_p3 = scmp.ge.s32.totalorder %s1093_s8, 4   ;;  %s1307_s26 = smov %s1012_s27 }
 0x13a   : > { %s1308_s27 = smov %s1016_s28  ;;  %s1309_s28 = smov %s1104_s11 }
 0x13b   : > { %s1310_s29 = smov %s1093_s8  ;;  %20 = sbr.rel (!%p18_p3) target bundleno = 5 (0x5), region = 86 }
 0x142   :  { %757 = vsyncpa [#allocation4], 1 }
 0x143   :  { %759 = vsyncpa [#allocation4 + $0x1], 1 }

</bundles_post_ra>
